<compile_context>
chip_gen: v7x
topology: tpu7x:2x2x1
jax: 0.10.0
libtpu: 0.0.40
codegen_flags: <defaults>
</compile_context>

<pallas_src>
import jax
import jax.numpy as jnp
from jax.experimental import pallas as pl
from jax.experimental.pallas import tpu as pltpu

BN_EPS = 1e-5
NEG_SLOPE = 0.1              # LeakyReLU slope used by add_conv


def _leaky(x):
    # LeakyReLU(0.1) == max(x, 0.1 * x) for 0 < slope < 1
    return jnp.maximum(x, NEG_SLOPE * x)


def _row_tile(hw, target=512):
    """Largest row tile <= target that evenly divides hw (multiple of 8, or hw itself)."""
    if hw <= target:
        return hw
    for t in range(target - target % 8, 7, -8):
        if hw % t == 0:
            return t
    return hw


# --------------------------------------------------------------------------
# Kernel 1: 1x1 conv (no bias) + folded BatchNorm + LeakyReLU, row-tiled.
# --------------------------------------------------------------------------
def _pointwise_conv_bn_leaky(x, w_bf16, scale, shift):
    B, HW, Cin = x.shape
    Cout = w_bf16.shape[1]
    TR = _row_tile(HW)

    def kernel(x_ref, w_ref, s_ref, b_ref, o_ref):
        xb = x_ref[...].astype(jnp.bfloat16)                       # (TR, Cin)
        y = jnp.dot(xb, w_ref[...], preferred_element_type=jnp.float32)
        y = y * s_ref[...] + b_ref[...]
        o_ref[...] = _leaky(y)

    return pl.pallas_call(
        kernel,
        out_shape=jax.ShapeDtypeStruct((B, HW, Cout), jnp.float32),
        grid_spec=pltpu.PrefetchScalarGridSpec(
            num_scalar_prefetch=0,
            grid=(B, HW // TR),
            in_specs=[
                pl.BlockSpec((pl.Squeezed(), TR, Cin), lambda b, r: (b, r, 0)),
                pl.BlockSpec(w_bf16.shape, lambda b, r: (0, 0)),
                pl.BlockSpec(scale.shape, lambda b, r: (0, 0)),
                pl.BlockSpec(shift.shape, lambda b, r: (0, 0)),
            ],
            out_specs=pl.BlockSpec((pl.Squeezed(), TR, Cout),
                                   lambda b, r: (b, r, 0)),
        ),
        compiler_params=pltpu.CompilerParams(
            dimension_semantics=("parallel", "parallel")),
    )(x, w_bf16, scale, shift)


# --------------------------------------------------------------------------
# Kernel 2: adaptive-weight fusion + expand 3x3 conv, one batch element / step.
# --------------------------------------------------------------------------
def _make_fuse_expand_kernel(H, W, C, CC, Cout):
    HW = H * W
    RS = 8 if H % 8 == 0 else H            # spatial rows per conv accumulator strip

    def kernel(l0_ref, l1_ref, l2_ref,
               w0_w, w0_s, w0_b,
               w1_w, w1_s, w1_b,
               w2_w, w2_s, w2_b,
               wl_w, wl_b,
               ex_w, ex_s, ex_b,
               o_ref,
               pad_ref):
        r0 = l0_ref[...]                                           # (HW, C) f32
        r1 = l1_ref[...]
        r2 = l2_ref[...]

        # ---- weight_level_i : 1x1 conv C->CC (no bias) + BN + LeakyReLU ----
        def side(r, w, s, b):
            v = jnp.dot(r.astype(jnp.bfloat16), w[...],
                        preferred_element_type=jnp.float32)
            return _leaky(v * s[...] + b[...])

        v0 = side(r0, w0_w, w0_s, w0_b)                            # (HW, CC)
        v1 = side(r1, w1_w, w1_s, w1_b)
        v2 = side(r2, w2_w, w2_s, w2_b)

        # ---- weight_levels : 1x1 conv (3*CC)->3 with bias; split to avoid lane concat ----
        wl = wl_w[...]                                             # (3*CC, 3) f32
        logits = (jnp.dot(v0, wl[0:CC, :], preferred_element_type=jnp.float32)
                  + jnp.dot(v1, wl[CC:2 * CC, :], preferred_element_type=jnp.float32)
                  + jnp.dot(v2, wl[2 * CC:3 * CC, :], preferred_element_type=jnp.float32)
                  + wl_b[...])                                     # (HW, 3)

        # ---- softmax over the 3 levels ----
        m = jnp.max(logits, axis=-1, keepdims=True)
        e = jnp.exp(logits - m)
        wsm = e / jnp.sum(e, axis=-1, keepdims=True)               # (HW, 3)

        # ---- weighted fusion (stays f32) ----
        fused = r0 * wsm[:, 0:1] + r1 * wsm[:, 1:2] + r2 * wsm[:, 2:3]   # (HW, C)

        # ---- expand : 3x3 conv, pad 1, no bias + folded BN + LeakyReLU ----
        # Single block store of the interior; only the never-written border strips
        # are zeroed (every step, so this stays correct when the batch axis is
        # sharded across TensorCores).
        zero_row = jnp.zeros((1, W + 2, C), pad_ref.dtype)
        zero_col = jnp.zeros((H + 2, 1, C), pad_ref.dtype)
        pad_ref[0:1, :, :] = zero_row
        pad_ref[H + 1:H + 2, :, :] = zero_row
        pad_ref[:, 0:1, :] = zero_col
        pad_ref[:, W + 1:W + 2, :] = zero_col
        pad_ref[1:H + 1, 1:W + 1, :] = fused.reshape(H, W, C).astype(pad_ref.dtype)

        # 9-tap conv, accumulated per row strip to bound the live accumulator.
        for h0 in range(0, H, RS):
            acc = jnp.zeros((RS * W, Cout), jnp.float32)
            for t in range(9):
                di, dj = divmod(t, 3)
                tap = pad_ref[h0 + di:h0 + di + RS, dj:dj + W, :]   # (RS, W, C) bf16
                acc = acc + jnp.dot(tap.reshape(RS * W, C), ex_w[t],
                                    preferred_element_type=jnp.float32)
            y = acc * ex_s[...] + ex_b[...]
            o_ref[h0 * W:(h0 + RS) * W, :] = _leaky(y)

    return kernel


def _fuse_and_expand(l0, l1, l2, p, H, W):
    B, HW, C = l0.shape
    CC = p["w0_w"].shape[1]
    Cout = p["ex_s"].shape[-1]

    kernel = _make_fuse_expand_kernel(H, W, C, CC, Cout)
    params = [p["w0_w"], p["w0_s"], p["w0_b"],
              p["w1_w"], p["w1_s"], p["w1_b"],
              p["w2_w"], p["w2_s"], p["w2_b"],
              p["wl_w"], p["wl_b"],
              p["ex_w"], p["ex_s"], p["ex_b"]]

    def full_spec(a):
        return pl.BlockSpec(a.shape, lambda b, n=a.ndim: (0,) * n)

    def act_spec(c):
        return pl.BlockSpec((pl.Squeezed(), HW, c), lambda b: (b, 0, 0))

    in_specs = [act_spec(C), act_spec(C), act_spec(C)] + [full_spec(a) for a in params]

    return pl.pallas_call(
        kernel,
        out_shape=jax.ShapeDtypeStruct((B, HW, Cout), jnp.float32),
        grid_spec=pltpu.PrefetchScalarGridSpec(
            num_scalar_prefetch=0,
            grid=(B,),
            in_specs=in_specs,
            out_specs=pl.BlockSpec((pl.Squeezed(), HW, Cout), lambda b: (b, 0, 0)),
            scratch_shapes=[
                pltpu.VMEM((H + 2, W + 2, C), jnp.bfloat16),   # zero-padded conv input
            ]),
        compiler_params=pltpu.CompilerParams(
            dimension_semantics=("parallel",)),    # batch items independent (2x on v7x megacore)
    )(l0, l1, l2, *params)


# --------------------------------------------------------------------------
# Wrapper (NCHW <-> lane-dense NHWC plumbing + nearest up-sampling)
# --------------------------------------------------------------------------
def _nearest_upsample(x_nhwc, factor):
    # F.interpolate(mode='nearest', scale_factor=f): out[h, w] = in[h // f, w // f]
    x = jnp.repeat(x_nhwc, factor, axis=1)
    return jnp.repeat(x, factor, axis=2)


def asff_level2_forward(x_level_0, x_level_1, x_level_2, p):
    """ASFF(level=2) forward; inputs are NCHW like the PyTorch module."""
    B, C0, H0, W0 = x_level_0.shape
    _, C, H1, W1 = x_level_1.shape
    _, C2, H, W = x_level_2.shape
    assert (H1, W1) == (2 * H0, 2 * W0) and (H, W) == (4 * H0, 4 * W0)
    assert C2 == C
    HW = H * W

    def to_rows(x):
        b, c, h, w = x.shape
        return jnp.transpose(x, (0, 2, 3, 1)).reshape(b, h * w, c).astype(jnp.float32)

    # compress_level_0 at level-0 resolution (Pallas kernel 1)
    l0c = _pointwise_conv_bn_leaky(to_rows(x_level_0), p["cmp_w"], p["cmp_s"], p["cmp_b"])
    # nearest up-sampling is pure layout plumbing -> wrapper
    l0 = _nearest_upsample(l0c.reshape(B, H0, W0, C), 4).reshape(B, HW, C)
    l1 = _nearest_upsample(
        jnp.transpose(x_level_1, (0, 2, 3, 1)).astype(jnp.float32), 2).reshape(B, HW, C)
    l2 = to_rows(x_level_2)

    out = _fuse_and_expand(l0, l1, l2, p, H, W)            # (B, HW, Cout) f32
    Cout = out.shape[-1]
    return jnp.transpose(out.reshape(B, H, W, Cout), (0, 3, 1, 2))


# --------------------------------------------------------------------------
# Deterministic synthetic parameters (shapes of ASFF(level=2, rfb=False))
# --------------------------------------------------------------------------
def init_params(key):
    C0, C = 512, 256          # dim[0], inter_dim == dim[2]
    CC = 16                   # compress_c (rfb=False)
    COUT = 256                # expand output channels for level 2
    keys = iter(jax.random.split(key, 32))

    def rnd(shape, scale=0.1):
        return (scale * jax.random.normal(next(keys), shape)).astype(jnp.float32)

    def bn_fold(c):           # BatchNorm2d in eval mode -> per-channel scale/shift
        gamma = 1.0 + rnd((1, c))
        beta = rnd((1, c))
        mean = rnd((1, c))
        var = jnp.abs(rnd((1, c))) + 1.0
        scale = gamma * jax.lax.rsqrt(var + BN_EPS)
        return scale, beta - mean * scale

    p = {}
    # compress_level_0: Conv2d(512, 256, 1, bias=False) + BN + LeakyReLU(0.1)
    p["cmp_w"] = rnd((C0, C)).astype(jnp.bfloat16)             # torch (256,512,1,1) -> (in,out)
    p["cmp_s"], p["cmp_b"] = bn_fold(C)
    # weight_level_{0,1,2}: Conv2d(256, 16, 1, bias=False) + BN + LeakyReLU
    for i in range(3):
        p[f"w{i}_w"] = rnd((C, CC)).astype(jnp.bfloat16)
        p[f"w{i}_s"], p[f"w{i}_b"] = bn_fold(CC)
    # weight_levels: Conv2d(48, 3, 1) with bias (no BN / activation)
    p["wl_w"] = rnd((3 * CC, 3))
    p["wl_b"] = rnd((1, 3))
    # expand: Conv2d(256, 256, 3, padding=1, bias=False) + BN + LeakyReLU
    p["ex_w"] = rnd((9, C, COUT)).astype(jnp.bfloat16)          # torch (O,I,3,3) -> (kh*kw, in, out)
    p["ex_s"], p["ex_b"] = bn_fold(COUT)
    return p


if __name__ == "__main__":
    key = jax.random.PRNGKey(0)
    kp, k0, k1, k2 = jax.random.split(key, 4)
    B, H0, W0 = 2, 4, 4                      # level-2 (output) spatial = 16x16
    params = init_params(kp)
    x_level_0 = jax.random.normal(k0, (B, 512, H0, W0), jnp.float32)         # NCHW
    x_level_1 = jax.random.normal(k1, (B, 256, 2 * H0, 2 * W0), jnp.float32)
    x_level_2 = jax.random.normal(k2, (B, 256, 4 * H0, 4 * W0), jnp.float32)
    y = jax.block_until_ready(asff_level2_forward(x_level_0, x_level_1, x_level_2, params))
    assert y.shape == (B, 256, 4 * H0, 4 * W0) and y.dtype == jnp.float32
    print("KERNEL_OK")
</pallas_src>

<mosaic_0001>
module attributes {stable_mosaic.version = 11 : i64} {
  func.func @kernel(%arg0: i32, %arg1: i32, %arg2: memref<1x16x512xf32, #tpu.memory_space<vmem>>, %arg3: memref<512x256xbf16, #tpu.memory_space<vmem>>, %arg4: memref<1x256xf32, #tpu.memory_space<vmem>>, %arg5: memref<1x256xf32, #tpu.memory_space<vmem>>, %arg6: memref<1x16x256xf32, #tpu.memory_space<vmem>>) attributes {dimension_semantics = [#tpu.dimension_semantics<parallel>, #tpu.dimension_semantics<parallel>], iteration_bounds = array<i64: 2, 1>, scalar_prefetch = 0 : i64, scratch_operands = 0 : i64, tpu.core_type = #tpu.core_type<tc>, window_params = [{transform_indices = @transform_0, window_bounds = array<i64: 1, 16, 512>}, {pipeline_mode = #tpu.pipeline_mode<synchronous>, transform_indices = @transform_1, window_bounds = array<i64: 512, 256>}, {pipeline_mode = #tpu.pipeline_mode<synchronous>, transform_indices = @transform_2, window_bounds = array<i64: 1, 256>}, {pipeline_mode = #tpu.pipeline_mode<synchronous>, transform_indices = @transform_3, window_bounds = array<i64: 1, 256>}, {transform_indices = @transform_4, window_bounds = array<i64: 1, 16, 256>}]} {
    %c0 = arith.constant 0 : index
    %c0_0 = arith.constant 0 : index
    %c0_1 = arith.constant 0 : index
    %0 = vector.load %arg2[%c0, %c0_0, %c0_1] : memref<1x16x512xf32, #tpu.memory_space<vmem>>, vector<1x16x512xf32>
    %1 = vector.shape_cast %0 : vector<1x16x512xf32> to vector<16x512xf32>
    %2 = arith.truncf %1 : vector<16x512xf32> to vector<16x512xbf16>
    %c0_2 = arith.constant 0 : index
    %c0_3 = arith.constant 0 : index
    %3 = vector.load %arg3[%c0_2, %c0_3] : memref<512x256xbf16, #tpu.memory_space<vmem>>, vector<512x256xbf16>
    %cst = arith.constant dense<0.000000e+00> : vector<16x256xf32>
    %4 = tpu.matmul %2, %3, %cst {dimension_numbers = #tpu.dot_dimension_numbers<[1], [0], [0], [1], [0, 0, 1, 1], [], []>} : vector<16x512xbf16>, vector<512x256xbf16>, vector<16x256xf32> -> vector<16x256xf32>
    %c0_4 = arith.constant 0 : index
    %c0_5 = arith.constant 0 : index
    %5 = vector.load %arg4[%c0_4, %c0_5] : memref<1x256xf32, #tpu.memory_space<vmem>>, vector<1x256xf32>
    %6 = vector.broadcast %5 : vector<1x256xf32> to vector<16x256xf32>
    %7 = arith.mulf %4, %6 : vector<16x256xf32>
    %c0_6 = arith.constant 0 : index
    %c0_7 = arith.constant 0 : index
    %8 = vector.load %arg5[%c0_6, %c0_7] : memref<1x256xf32, #tpu.memory_space<vmem>>, vector<1x256xf32>
    %9 = vector.broadcast %8 : vector<1x256xf32> to vector<16x256xf32>
    %10 = arith.addf %7, %9 : vector<16x256xf32>
    %cst_8 = arith.constant 1.000000e-01 : f32
    %11 = vector.broadcast %cst_8 : f32 to vector<16x256xf32>
    %12 = arith.mulf %11, %10 : vector<16x256xf32>
    %13 = arith.maximumf %10, %12 : vector<16x256xf32>
    %c0_9 = arith.constant 0 : index
    %c0_10 = arith.constant 0 : index
    %c0_11 = arith.constant 0 : index
    %14 = vector.load %arg6[%c0_9, %c0_10, %c0_11] : memref<1x16x256xf32, #tpu.memory_space<vmem>>, vector<1x16x256xf32>
    %15 = vector.shape_cast %14 : vector<1x16x256xf32> to vector<16x256xf32>
    %16 = vector.shape_cast %13 : vector<16x256xf32> to vector<1x16x256xf32>
    tpu.vector_store %arg6[%c0_9, %c0_10, %c0_11], %16 {strides = array<i32>} : memref<1x16x256xf32, #tpu.memory_space<vmem>>, vector<1x16x256xf32>,
    return
  }
  func.func @transform_0(%arg0: i32, %arg1: i32) -> (i32, i32, i32) {
    %c0_i32 = arith.constant 0 : i32
    %c0_i32_0 = arith.constant 0 : i32
    return %arg0, %arg1, %c0_i32 : i32, i32, i32
  }
  func.func @transform_1(%arg0: i32, %arg1: i32) -> (i32, i32) {
    %c0_i32 = arith.constant 0 : i32
    %c0_i32_0 = arith.constant 0 : i32
    %c0_i32_1 = arith.constant 0 : i32
    return %c0_i32, %c0_i32_0 : i32, i32
  }
  func.func @transform_2(%arg0: i32, %arg1: i32) -> (i32, i32) {
    %c0_i32 = arith.constant 0 : i32
    %c0_i32_0 = arith.constant 0 : i32
    %c0_i32_1 = arith.constant 0 : i32
    return %c0_i32, %c0_i32_0 : i32, i32
  }
  func.func @transform_3(%arg0: i32, %arg1: i32) -> (i32, i32) {
    %c0_i32 = arith.constant 0 : i32
    %c0_i32_0 = arith.constant 0 : i32
    %c0_i32_1 = arith.constant 0 : i32
    return %c0_i32, %c0_i32_0 : i32, i32
  }
  func.func @transform_4(%arg0: i32, %arg1: i32) -> (i32, i32, i32) {
    %c0_i32 = arith.constant 0 : i32
    %c0_i32_0 = arith.constant 0 : i32
    return %arg0, %arg1, %c0_i32 : i32, i32, i32
  }
}

</mosaic_0001>

<bundles_post_ra>
// kernel: tpu_custom_call.1
= control target key start
LH: loop header
LB: loop body
LE: loop exit
PB: predicated region body
PF: predicated region fallthrough
CT: control target
= control target key end

     0   :  { %9 = vsyncpa [#allocation3], 0  ;;  %s1570_s0 = inlined_call_operand.hbm [shape: f32[2,16,512], index: 0, kind: input, shape index: {}]   ;;  %s1571_s1 = inlined_call_operand.hbm [shape: bf16[512,256], index: 1, kind: input, shape index: {}]   ;;  %s1572_s2 = inlined_call_operand.vmem [shape: f32[1,256], index: 2, kind: input, shape index: {}]   ;;  %s1573_s3 = inlined_call_operand.vmem [shape: f32[1,256], index: 3, kind: input, shape index: {}]   ;;  %s1574_s4 = inlined_call_operand.hbm [shape: f32[2,16,256], index: 4, kind: output, shape index: {}]  }
   0x1   :  { %11 = vsyncpa [#allocation3 + $0x1], 0 }
   0x2   :  { %12 = vsyncpa [#allocation6], 0 }
   0x3   :  { %13 = vsyncpa [#allocation4], 0 }
   0x4   :  { %15 = vsyncpa [#allocation4 + $0x1], 0  ;;  %s1334_s15 = smov 0   ;;  %s1336_s16 = smov 0  }
   0x5   :  { %s1338_s17 = smov 0   ;;  %s1340_s18 = smov 0  }
   0x6   :  { %s1342_s19 = smov 0   ;;  %s1344_s20 = smov 0  }
   0x7 LB: > { %s892_s21 = sadd.s32 4294967295, %s1298_s20   ;;  %s893_s22 = sadd.s32 4294967294, %s1298_s20   ;;  %s1298_s20 = sphi %s1344_s20, %s21_s20   ;;  %s1294_s19 = sphi %s1342_s19, %s1598_s19   ;;  %s1290_s18 = sphi %s1340_s18, %s1597_s18   ;;  %s1286_s17 = sphi %s1338_s17, %s1596_s17   ;;  %s1282_s16 = sphi %s1336_s16, %s1595_s16   ;;  %s1278_s15 = sphi %s1334_s15, %s1594_s15  }
   0x8   : > { %p55_p0 = scmp.ne.s32.totalorder %s1282_s16, %s1278_s15  ;;  %p1368_p1 = scmp.eq.s32.totalorder %s892_s21, 0 }
   0x9   : > { %p1372_p2 = scmp.eq.s32.totalorder %s892_s21, 1  ;;  %p150_p3 = scmp.eq.s32.totalorder %s893_s22, 1 }
   0xa   : > { %s1579_s23 = scalar_select %p1368_p1, 1, 0 }
   0xb   : > { %s1580_s24 = scalar_select %p1372_p2, 1, 0 }
   0xc   : > { %p1378_p4 = por %p1368_p1, %p55_p0  ;;  %p894_p5 = scmp.ge.s32.totalorder %s1298_s20, 1 }
   0xd   : > { %p1383_p6 = por %p150_p3, %p55_p0  ;;  %p157_p7 = scmp.lt.s32.totalorder %s1298_s20, 3 }
   0xe   : > { %s1581_s25 = scalar_select %p1378_p4, 1, 0 }
   0xf   : > { %s1582_s26 = scalar_select %p1383_p6, 1, 0 }
  0x10   : > { %p1388_p8 = pnand %p894_p5, %p157_p7  ;;  %s1300_s28 = smov [#allocation5]  }
  0x11   : > { %s169_s29 = sshll.u32 %s1300_s28, 4  ;;  %s33_s5 = sadd.s32 1, %s1294_s19  ;;  %s170_s29 = int_to_ptr.vmem [resolvable:$true] %s169_s29 }
  0x12   : > { %s1583_s27 = scalar_select %p1388_p8, 1, 0 }
  0x13   : > { %p987_p9 = pneg %p1388_p8  ;;  %s1154_s8 = scalar_lea.hbm %s1571_s1, 8192 }
  0x14   : > { %p1155_p12 = scmp.ne.s32.totalorder %s1571_s1, %s1154_s8  ;;  %p1161_p5 = scmp.lt.u32.totalorder %s1154_s8, %s1571_s1 }
  0x15   : > { %p1397_p11 = pnand %p987_p9, %p1368_p1 }
  0x17   : > { %p1156_p13 = pneg %p1397_p11 }
  0x19   : > { %p1157_p0 = pnand %p1156_p13, %p1155_p12 }
  0x1b   : > { %p1158_p3 = pneg %p1157_p0 }
  0x1d   : > { %p1163_p7 = pnand %p1161_p5, %p1158_p3 }
  0x1f   : > { %1166 = shalt.err (!%p1163_p7)
}
  0x20   : > { %s1167_s13 = scalar_lea.vmem %s170_s29, 8192  ;;  %p1175_p1 = scmp.lt.s32.totalorder %s170_s29, %s170_s29 }
  0x21   : > { %p1168_p9 = scmp.ne.s32.totalorder %s170_s29, %s1167_s13  ;;  %p1176_p4 = scmp.lt.s32.totalorder %s1167_s13, %s1167_s13 }
  0x23   : > { %p1170_p10 = pnand %p1168_p9, %p1156_p13  ;;  %p1177_p8 = por %p1176_p4, %p1175_p1 }
  0x25   : > { %p1171_p6 = pneg %p1170_p10 }
  0x27   : > { %p1178_p2 = pnand %p1177_p8, %p1171_p6 }
  0x29   : > { %1181 = shalt.err (!%p1178_p2)
}
  0x2a   : > { %s1301_s14 = smov 128   ;;  %s1302_s21 = smov 8  }
  0x2b   : > { %990 = dma.hbm_to_vmem [thread:$0]  (!%p1397_p11), %s1571_s1, 8192, %s170_s29, [#allocation6], %s1301_s14, %s1301_s14, %s1302_s21  }
  0x2c   : > { %p35_p1 = scmp.ge.s32.totalorder %s33_s5, 2  ;;  %s42_s6 = sadd.s32 1, %s1286_s17 }
  0x2d   : > { %p49_p2 = scmp.ne.s32.totalorder %s1286_s17, %s1282_s16  ;;  %p50_p4 = scmp.eq.s32.totalorder %s1298_s20, 0 }
  0x2e   : > { %s1600_s5 = smov (%p35_p1, %s33_s5), 0  ;;  %p1586_p8 = scmp.ne.s32.totalorder %s1580_s24, 0 }
  0x2f   : > { %p1424_p6 = por %p50_p4, %p49_p2  ;;  %s37_s30 = ssub.s32 %s1294_s19, %s1600_s5 }
  0x30   : > { %p1430_p10 = por %p1586_p8, %p49_p2  ;;  %p1000_p12 = scmp.lt.s32.totalorder %s1298_s20, 2 }
  0x31   : > { %p40_p11 = scmp.eq.s32.totalorder %s37_s30, 0  ;;  %s189_s29 = sand.u32 1, %s1286_s17  }
  0x32   : > { %s897_s9 = sshll.u32 %s189_s29, 6  ;;  %s973_s11 = sshll.u32 %s1294_s19, 10 }
  0x33   : > { %s1439_s10 = scalar_select %p40_p11, %s1286_s17, %s42_s6  }
  0x34   : > { %s1445_s14 = scalar_lea.hbm %s1570_s0, %s973_s11  ;;  %s193_s24 = scalar_lea.vmem [#allocation2], %s897_s9 }
  0x35   : > { %s203_s21 = sshll.u32 %s193_s24, 4  ;;  %p1451_p13 = pnand %p1000_p12, %p1424_p6  ;;  %s1447_s21 = int_to_ptr.vmem [resolvable:$true] %s203_s21 }
  0x36   : > { %s1455_s28 = scalar_lea.sflag [#allocation3], %s189_s29  ;;  %s1182_s6 = scalar_lea.hbm %s1445_s14, 1024 }
  0x37   : > { %p1183_p0 = scmp.ne.s32.totalorder %s1445_s14, %s1182_s6  ;;  %p1184_p3 = pneg %p1451_p13 }
  0x38   : > { %s1187_s7 = scalar_lea.hbm %s1570_s0, 2048  ;;  %p1188_p9 = scmp.lt.u32.totalorder %s1445_s14, %s1570_s0 }
  0x39   : > { %p1185_p5 = pnand %p1184_p3, %p1183_p0  ;;  %p1189_p1 = scmp.lt.u32.totalorder %s1187_s7, %s1182_s6 }
  0x3a   : > { %p1191_p4 = scmp.lt.u32.totalorder %s1182_s6, %s1445_s14 }
  0x3b   : > { %p1186_p7 = pneg %p1185_p5  ;;  %p1190_p2 = por %p1189_p1, %p1188_p9 }
  0x3d   : > { %p1192_p6 = por %p1191_p4, %p1190_p2 }
  0x3f   : > { %p1193_p8 = pnand %p1192_p6, %p1186_p7 }
  0x41   : > { %1196 = shalt.err (!%p1193_p8)
}
  0x42   : > { %s1197_s29 = scalar_lea.vmem %s1447_s21, 1024  ;;  %s1303_s13 = smov [#allocation2]  }
  0x43   : > { %p1198_p12 = scmp.ne.s32.totalorder %s1447_s21, %s1197_s29  ;;  %s1202_s24 = sshll.u32 %s1303_s13, 4  ;;  %s1203_s24 = int_to_ptr.vmem [resolvable:$false] %s1202_s24 }
  0x44   : > { %s1204_s30 = scalar_lea.vmem %s1203_s24, 2048  ;;  %p1205_p5 = scmp.lt.s32.totalorder %s1447_s21, %s1203_s24 }
  0x45   : > { %p1200_p11 = pnand %p1198_p12, %p1184_p3  ;;  %p1206_p9 = scmp.lt.s32.totalorder %s1204_s30, %s1197_s29 }
  0x47   : > { %p1201_p0 = pneg %p1200_p11  ;;  %p1207_p1 = por %p1206_p9, %p1205_p5 }
  0x49   : > { %p1208_p2 = pnand %p1207_p1, %p1201_p0 }
  0x4b   : > { %1211 = shalt.err (!%p1208_p2)
}
  0x4c   : > { %s1304_s6 = smov 512   ;;  %s1305_s9 = smov 32  }
  0x4d   : > { %994 = dma.hbm_to_vmem [thread:$0]  (!%p1451_p13), %s1445_s14, 1024, %s1447_s21, %s1455_s28, %s1304_s6, %s1304_s6, %s1305_s9  }
  0x4e   : > { %p1589_p3 = scmp.ne.s32.totalorder %s1583_s27, 0 }
  0x4f   : > { %s1486_s7 = sand.u32 (!%p1589_p3), 1, %s1282_s16   ;;  %p1590_p7 = scmp.ne.s32.totalorder (!%p1589_p3), %s1581_s25, 0 }
  0x50   : > { %215 = sbr.rel (%p1589_p3) target bundleno = 397 (0x18d), region = 36  ;;  %s901_s11 = sshll.u32 (!%p1589_p3), %s1486_s7, 6 }
  0x51   : > { %s218_s12 = scalar_lea.sflag (!%p1589_p3), [#allocation3], %s1486_s7  ;;  %s1490_s29 = scalar_lea.vmem (!%p1589_p3), [#allocation2], %s901_s11 }
  0x57   : > { %1265 = dma.done.wait (%p1590_p7), %s218_s12, 1024  }
  0x58   : > { %1267 = vsyncadd (%p1590_p7), %s218_s12, 4294966272  ;;  %p1591_p13 = scmp.ne.s32.totalorder %s1579_s23, 0 }
  0x5a   : > { %1269 = dma.done.wait (%p1591_p13), [#allocation6], 8192  }
  0x5b   : > { %1271 = vsyncadd (%p1591_p13), [#allocation6], 4294959104  ;;  %v1058_v0 = vld [vmem:[#allocation5 + $0x4] ss:$8 sps:$4 sm:$0xff]   ;;  %v1062_v2 = vld [vmem:[#allocation5] ss:$8 sps:$4 sm:$0xff]  }
  0x5c   : > { %v1060_v1 = vld [vmem:[#allocation5 + $0x104] ss:$8 sps:$4 sm:$0xff]   ;;  %648 = vmatprep.subr.bf16.mxu1 %v1058_v0  ;;  %v1063_v3 = vld [vmem:[#allocation5 + $0x100] ss:$8 sps:$4 sm:$0xff]   ;;  %v1064_v4 = vld [vmem:[#allocation5 + $0x14] ss:$8 sps:$4 sm:$0xff]  }
  0x5d   : > { %691 = vmatprep.subr.bf16.mxu0 %v1060_v1  ;;  %649 = vmatpush1.bf16.msra.mxu1 %v1062_v2  ;;  %v1066_v5 = vld [vmem:[#allocation5 + $0x114] ss:$8 sps:$4 sm:$0xff]   ;;  %v1068_v6 = vld [vmem:[#allocation5 + $0x10] ss:$8 sps:$4 sm:$0xff]   ;;  %v1070_v8 = vld [vmem:[#allocation5 + $0x24] ss:$8 sps:$4 sm:$0xff]  }
  0x5e   : > { %692 = vmatpush1.bf16.msra.mxu0 %v1063_v3  ;;  %650 = vmatprep.subr.bf16.mxu1 %v1064_v4  ;;  %v1069_v7 = vld [vmem:[#allocation5 + $0x110] ss:$8 sps:$4 sm:$0xff]   ;;  %v1072_v9 = vld [vmem:[#allocation5 + $0x124] ss:$8 sps:$4 sm:$0xff]   ;;  %v1074_v10 = vld [vmem:[#allocation5 + $0x20] ss:$8 sps:$4 sm:$0xff]  }
  0x5f   : > { %693 = vmatprep.subr.bf16.mxu0 %v1066_v5  ;;  %v1075_v11 = vld [vmem:[#allocation5 + $0x120] ss:$8 sps:$4 sm:$0xff]   ;;  %v1076_v12 = vld [vmem:[#allocation5 + $0x34] ss:$8 sps:$4 sm:$0xff]   ;;  %v1080_v14 = vld [vmem:[#allocation5 + $0x30] ss:$8 sps:$4 sm:$0xff]  }
  0x60   : > { %v1078_v13 = vld [vmem:[#allocation5 + $0x134] ss:$8 sps:$4 sm:$0xff]   ;;  %v1081_v15 = vld [vmem:[#allocation5 + $0x130] ss:$8 sps:$4 sm:$0xff]   ;;  %v1082_v16 = vld [vmem:[#allocation5 + $0x44] ss:$8 sps:$4 sm:$0xff]  }
  0x61   : > { %651 = vmatpush1.bf16.msra.mxu1 %v1068_v6  ;;  %v1084_v17 = vld [vmem:[#allocation5 + $0x144] ss:$8 sps:$4 sm:$0xff]   ;;  %v1086_v18 = vld [vmem:[#allocation5 + $0x40] ss:$8 sps:$4 sm:$0xff]   ;;  %v1088_v20 = vld [vmem:[#allocation5 + $0x54] ss:$8 sps:$4 sm:$0xff]  }
  0x62   : > { %694 = vmatpush1.bf16.msra.mxu0 %v1069_v7  ;;  %652 = vmatprep.subr.bf16.mxu1 %v1070_v8  ;;  %v1087_v19 = vld [vmem:[#allocation5 + $0x140] ss:$8 sps:$4 sm:$0xff]   ;;  %v1090_v21 = vld [vmem:[#allocation5 + $0x154] ss:$8 sps:$4 sm:$0xff]   ;;  %v1092_v22 = vld [vmem:[#allocation5 + $0x50] ss:$8 sps:$4 sm:$0xff]  }
  0x63   : > { %695 = vmatprep.subr.bf16.mxu0 %v1072_v9  ;;  %v1093_v23 = vld [vmem:[#allocation5 + $0x150] ss:$8 sps:$4 sm:$0xff]   ;;  %v1094_v24 = vld [vmem:[#allocation5 + $0x64] ss:$8 sps:$4 sm:$0xff]   ;;  %v1098_v26 = vld [vmem:[#allocation5 + $0x60] ss:$8 sps:$4 sm:$0xff]  }
  0x64   : > { %v1096_v25 = vld [vmem:[#allocation5 + $0x164] ss:$8 sps:$4 sm:$0xff]   ;;  %v1099_v27 = vld [vmem:[#allocation5 + $0x160] ss:$8 sps:$4 sm:$0xff]   ;;  %v1100_v28 = vld [vmem:[#allocation5 + $0x74] ss:$8 sps:$4 sm:$0xff]  }
  0x65   : > { %653 = vmatpush1.bf16.msra.mxu1 %v1074_v10  ;;  %v1102_v29 = vld [vmem:[#allocation5 + $0x174] ss:$8 sps:$4 sm:$0xff]   ;;  %v1104_v30 = vld [vmem:[#allocation5 + $0x70] ss:$8 sps:$4 sm:$0xff]   ;;  %v1106_v32 = vld [vmem:[#allocation5 + $0x84] ss:$8 sps:$4 sm:$0xff]  }
  0x66   : > { %696 = vmatpush1.bf16.msra.mxu0 %v1075_v11  ;;  %654 = vmatprep.subr.bf16.mxu1 %v1076_v12  ;;  %v1105_v31 = vld [vmem:[#allocation5 + $0x170] ss:$8 sps:$4 sm:$0xff]   ;;  %v1108_v33 = vld [vmem:[#allocation5 + $0x184] ss:$8 sps:$4 sm:$0xff]   ;;  %v1110_v34 = vld [vmem:[#allocation5 + $0x80] ss:$8 sps:$4 sm:$0xff]   ;;  %v736_v12 = vlaneseq }
  0x67   : > { %697 = vmatprep.subr.bf16.mxu0 %v1078_v13  ;;  %v1111_v35 = vld [vmem:[#allocation5 + $0x180] ss:$8 sps:$4 sm:$0xff]   ;;  %v1112_v36 = vld [vmem:[#allocation5 + $0x94] ss:$8 sps:$4 sm:$0xff]   ;;  %v1116_v38 = vld [vmem:[#allocation5 + $0x90] ss:$8 sps:$4 sm:$0xff]  }
  0x68   : > { %v1114_v37 = vld [vmem:[#allocation5 + $0x194] ss:$8 sps:$4 sm:$0xff]   ;;  %v1117_v39 = vld [vmem:[#allocation5 + $0x190] ss:$8 sps:$4 sm:$0xff]   ;;  %v1118_v40 = vld [vmem:[#allocation5 + $0xa4] ss:$8 sps:$4 sm:$0xff]  }
  0x69   : > { %655 = vmatpush1.bf16.msra.mxu1 %v1080_v14  ;;  %v1120_v41 = vld [vmem:[#allocation5 + $0x1a4] ss:$8 sps:$4 sm:$0xff]   ;;  %v1122_v42 = vld [vmem:[#allocation5 + $0xa0] ss:$8 sps:$4 sm:$0xff]   ;;  %v1124_v44 = vld [vmem:[#allocation5 + $0xb4] ss:$8 sps:$4 sm:$0xff]  }
  0x6a   : > { %698 = vmatpush1.bf16.msra.mxu0 %v1081_v15  ;;  %656 = vmatprep.subr.bf16.mxu1 %v1082_v16  ;;  %v1123_v43 = vld [vmem:[#allocation5 + $0x1a0] ss:$8 sps:$4 sm:$0xff]   ;;  %v1126_v45 = vld [vmem:[#allocation5 + $0x1b4] ss:$8 sps:$4 sm:$0xff]   ;;  %v1128_v50 = vld [vmem:[#allocation5 + $0xb0] ss:$8 sps:$4 sm:$0xff]  }
  0x6b   : > { %699 = vmatprep.subr.bf16.mxu0 %v1084_v17  ;;  %v253_v46 = vld [vmem:[%s1490_s29 + $0x8] sm:$0xff]  ;;  %v255_v48 = vld [vmem:[%s1490_s29 + $0x18] sm:$0xff]  ;;  %v252_v6 = vld [vmem:[%s1490_s29] sm:$0xff]  ;;  %v737_v13 = vshrl.u32 %v736_v12, 7  ;;  %s903_s21 = sshll.u32 %s1486_s7, 5  ;;  %s974_s13 = sshll.u32 %s1290_s18, 9 }
  0x6c   : > { %v257_v47 = vld [vmem:[%s1490_s29 + $0x28] sm:$0xff]  ;;  %v259_v49 = vld [vmem:[%s1490_s29 + $0x38] sm:$0xff]  ;;  %v256_v7 = vld [vmem:[%s1490_s29 + $0x20] sm:$0xff]  ;;  %s249_s22 = scalar_lea.vmem [#allocation7], %s903_s21  ;;  %s1521_s6 = scalar_lea.hbm %s1574_s4, %s974_s13 }
  0x6d   : > { %657 = vmatpush1.bf16.msra.mxu1 %v1086_v18  ;;  %v1129_v51 = vld [vmem:[#allocation5 + $0x1b0] ss:$8 sps:$4 sm:$0xff]   ;;  %v261_v52 = vpack.c.bf16 %v257_v47, %v253_v46  ;;  %v263_v53 = vpack.c.bf16 %v259_v49, %v255_v48  ;;  %v1130_v54 = vld [vmem:[#allocation5 + $0xc4] ss:$8 sps:$4 sm:$0xff]   ;;  %v1134_v56 = vld [vmem:[#allocation5 + $0xc0] ss:$8 sps:$4 sm:$0xff]   ;;  %v260_v10 = vpack.c.bf16 %v256_v7, %v252_v6 }
  0x6e   : > { %700 = vmatpush1.bf16.msra.mxu0 %v1087_v19  ;;  %658 = vmatprep.subr.bf16.mxu1 %v1088_v20  ;;  %v1132_v55 = vld [vmem:[#allocation5 + $0x1c4] ss:$8 sps:$4 sm:$0xff]   ;;  %v1135_v57 = vld [vmem:[#allocation5 + $0x1c0] ss:$8 sps:$4 sm:$0xff]   ;;  %v1136_v58 = vld [vmem:[#allocation5 + $0xd4] ss:$8 sps:$4 sm:$0xff]  }
  0x6f   : > { %701 = vmatprep.subr.bf16.mxu0 %v1090_v21  ;;  %680 = vmatprep.mubr.bf16.mxu1 %v261_v52  ;;  %v1138_v59 = vld [vmem:[#allocation5 + $0x1d4] ss:$8 sps:$4 sm:$0xff]   ;;  %v1140_v60 = vld [vmem:[#allocation5 + $0xd0] ss:$8 sps:$4 sm:$0xff]   ;;  %v1142_v62 = vld [vmem:[#allocation5 + $0xe4] ss:$8 sps:$4 sm:$0xff]  }
  0x70   : > { %723 = vmatprep.mubr.bf16.mxu0 %v263_v53  ;;  %v1141_v61 = vld [vmem:[#allocation5 + $0x1d0] ss:$8 sps:$4 sm:$0xff]   ;;  %v1144_v63 = vld [vmem:[#allocation5 + $0x1e4] ss:$8 sps:$4 sm:$0xff]   ;;  %v1146_v0 = vld [vmem:[#allocation5 + $0xe0] ss:$8 sps:$4 sm:$0xff]  }
  0x71   : > { %659 = vmatpush1.bf16.msra.mxu1 %v1092_v22  ;;  %v1147_v1 = vld [vmem:[#allocation5 + $0x1e0] ss:$8 sps:$4 sm:$0xff]   ;;  %v1148_v2 = vld [vmem:[#allocation5 + $0xf4] ss:$8 sps:$4 sm:$0xff]   ;;  %v1152_v4 = vld [vmem:[#allocation5 + $0xf0] ss:$8 sps:$4 sm:$0xff]  }
  0x72   : > { %702 = vmatpush1.bf16.msra.mxu0 %v1093_v23  ;;  %660 = vmatprep.subr.bf16.mxu1 %v1094_v24  ;;  %v1150_v3 = vld [vmem:[#allocation5 + $0x1f4] ss:$8 sps:$4 sm:$0xff]   ;;  %v1153_v5 = vld [vmem:[#allocation5 + $0x1f0] ss:$8 sps:$4 sm:$0xff]   ;;  %v738_v14 = vsub.s32 0, %v737_v13  ;;  %v742_v16 = vsub.s32 1, %v737_v13 }
  0x73   : > { %703 = vmatprep.subr.bf16.mxu0 %v1096_v25  ;;  %v254_v8 = vld [vmem:[%s1490_s29 + $0x10] sm:$0xff]  ;;  %v734_v15 = vld [vmem:[%s1572_s2] sm:$0x3]  ;;  %s795_s28 = sshll.u32 %s249_s22, 4  ;;  %s779_s18 = scalar_lea.sflag [#allocation4], %s1486_s7  ;;  %s1516_s28 = int_to_ptr.vmem [resolvable:$true] %s795_s28 }
  0x74   : > { %v258_v9 = vld [vmem:[%s1490_s29 + $0x30] sm:$0xff]  ;;  %v750_v17 = vld [vmem:[%s1573_s3] sm:$0x3]  ;;  %v739_v18 = vrot.slane %v734_v15, %v738_v14  ;;  %v743_v21 = vrot.slane %v734_v15, %v742_v16  ;;  %s1212_s9 = scalar_lea.vmem %s1516_s28, 512  ;;  %s1306_s11 = smov [#allocation7]  }
  0x75   : > { %661 = vmatpush1.bf16.msra.mxu1 %v1098_v26  ;;  %v262_v11 = vpack.c.bf16 %v258_v9, %v254_v8  ;;  %v755_v23 = vrot.slane %v750_v17, %v738_v14  ;;  %p1213_p4 = scmp.ne.s32.totalorder %s1516_s28, %s1212_s9  ;;  %s1216_s12 = sshll.u32 %s1306_s11, 4  ;;  %s1217_s12 = int_to_ptr.vmem [resolvable:$false] %s1216_s12 }
  0x76   : > { %704 = vmatpush1.bf16.msra.mxu0 %v1099_v27  ;;  %662 = vmatprep.subr.bf16.mxu1 %v1100_v28  ;;  %v759_v27 = vrot.slane %v750_v17, %v742_v16  ;;  %s1218_s29 = scalar_lea.vmem %s1217_s12, 1024  ;;  %p1219_p12 = scmp.lt.s32.totalorder %s1516_s28, %s1217_s12 }
  0x77   : > { %705 = vmatprep.subr.bf16.mxu0 %v1102_v29  ;;  %p1214_p6 = pnand %p1213_p4, %p1430_p10  ;;  %p1220_p11 = scmp.lt.s32.totalorder %s1218_s29, %s1212_s9 }
  0x79   : > { %663 = vmatpush1.bf16.msra.mxu1 %v1104_v30  ;;  %p1215_p8 = pneg %p1214_p6  ;;  %p1221_p0 = por %p1220_p11, %p1219_p12 }
  0x7a   : > { %706 = vmatpush1.bf16.msra.mxu0 %v1105_v31  ;;  %664 = vmatprep.subr.bf16.mxu1 %v1106_v32 }
  0x7b   : > { %707 = vmatprep.subr.bf16.mxu0 %v1108_v33  ;;  %p1222_p5 = pnand %p1221_p0, %p1215_p8 }
  0x7d   : > { %665 = vmatpush1.bf16.msra.mxu1 %v1110_v34 }
  0x7e   : > { %708 = vmatpush1.bf16.msra.mxu0 %v1111_v35  ;;  %666 = vmatprep.subr.bf16.mxu1 %v1112_v36 }
  0x7f   : > { %709 = vmatprep.subr.bf16.mxu0 %v1114_v37 }
  0x81   : > { %667 = vmatpush1.bf16.msra.mxu1 %v1116_v38 }
  0x82   : > { %710 = vmatpush1.bf16.msra.mxu0 %v1117_v39  ;;  %668 = vmatprep.subr.bf16.mxu1 %v1118_v40 }
  0x83   : > { %711 = vmatprep.subr.bf16.mxu0 %v1120_v41 }
  0x85   : > { %669 = vmatpush1.bf16.msra.mxu1 %v1122_v42 }
  0x86   : > { %712 = vmatpush1.bf16.msra.mxu0 %v1123_v43  ;;  %670 = vmatprep.subr.bf16.mxu1 %v1124_v44 }
  0x87   : > { %713 = vmatprep.subr.bf16.mxu0 %v1126_v45 }
  0x89   : > { %671 = vmatpush1.bf16.msra.mxu1 %v1128_v50 }
  0x8a   : > { %714 = vmatpush1.bf16.msra.mxu0 %v1129_v51  ;;  %672 = vmatprep.subr.bf16.mxu1 %v1130_v54 }
  0x8b   : > { %715 = vmatprep.subr.bf16.mxu0 %v1132_v55 }
  0x8d   : > { %673 = vmatpush1.bf16.msra.mxu1 %v1134_v56 }
  0x8e   : > { %716 = vmatpush1.bf16.msra.mxu0 %v1135_v57  ;;  %674 = vmatprep.subr.bf16.mxu1 %v1136_v58 }
  0x8f   : > { %717 = vmatprep.subr.bf16.mxu0 %v1138_v59 }
  0x91   : > { %675 = vmatpush1.bf16.msra.mxu1 %v1140_v60 }
  0x92   : > { %718 = vmatpush1.bf16.msra.mxu0 %v1141_v61  ;;  %676 = vmatprep.subr.bf16.mxu1 %v1142_v62 }
  0x93   : > { %719 = vmatprep.subr.bf16.mxu0 %v1144_v63 }
  0x95   : > { %677 = vmatpush1.bf16.msra.mxu1 %v1146_v0 }
  0x96   : > { %720 = vmatpush1.bf16.msra.mxu0 %v1147_v1  ;;  %678 = vmatprep.subr.bf16.mxu1 %v1148_v2 }
  0x97   : > { %721 = vmatprep.subr.bf16.mxu0 %v1150_v3 }
  0x99   : > { %679 = vmatpush1.bf16.msra.mxu1 %v1152_v4 }
  0x9a   : > { %722 = vmatpush1.bf16.msra.mxu0 %v1153_v5 }
  0x9c   : > { %681 = vmatmul.mubr.bf16.vlgmr.msra.gmra.mrb[0].mxu1 %v260_v10 }
  0x9d   : > { %724 = vmatmul.mubr.bf16.vlgmr.msra.gmra.mrb[0].mxu0 %v262_v11 }
 0x16f   : > { %v682_v19 = vpop.f32.mrb[0].mxu1 }
 0x170   : > { %v725_v20 = vpop.f32.mrb[0].mxu0  ;;  %v684_v24 = vpop.f32.mrb[1].mxu1 }
 0x171   : > { %v726_v22 = vadd.f32 %v725_v20, %v682_v19  ;;  %v727_v25 = vpop.f32.mrb[1].mxu0  ;;  %v686_v28 = vpop.f32.mrb[2].mxu1 }
 0x172   : > { %v728_v26 = vadd.f32 %v727_v25, %v684_v24  ;;  %v729_v29 = vpop.f32.mrb[2].mxu0  ;;  %v688_v32 = vpop.f32.mrb[3].mxu1 }
 0x173   : > { %v746_v30 = vmul.f32 %v739_v18, %v726_v22  ;;  %v730_v31 = vadd.f32 %v729_v29, %v686_v28  ;;  %v731_v33 = vpop.f32.mrb[3].mxu0 }
 0x174   : > { %v747_v34 = vmul.f32 %v743_v21, %v728_v26  ;;  %v732_v35 = vadd.f32 %v731_v33, %v688_v32 }
 0x175   : > { %v762_v36 = vadd.f32 %v755_v23, %v746_v30  ;;  %v748_v37 = vmul.f32 %v739_v18, %v730_v31 }
 0x176   : > { %v763_v38 = vadd.f32 %v759_v27, %v747_v34  ;;  %v749_v39 = vmul.f32 %v743_v21, %v732_v35 }
 0x177   : > { %v766_v40 = vmul.f32 0.1, %v762_v36  ;;  %v764_v41 = vadd.f32 %v755_v23, %v748_v37 }
 0x178   : > { %v767_v42 = vmul.f32 0.1, %v763_v38  ;;  %v765_v43 = vadd.f32 %v759_v27, %v749_v39 }
 0x179   : > { %v770_v44 = vmax.f32 %v762_v36, %v766_v40  ;;  %v768_v45 = vmul.f32 0.1, %v764_v41 }
 0x17a   : > { %v771_v46 = vmax.f32 %v763_v38, %v767_v42  ;;  %v769_v47 = vmul.f32 0.1, %v765_v43 }
 0x17b   : > { %774 = vst [vmem:[%s249_s22] sm:$0xff] %v770_v44  ;;  %v772_v48 = vmax.f32 %v764_v41, %v768_v45 }
 0x17c   : > { %775 = vst [vmem:[%s249_s22 + $0x8] sm:$0xff] %v771_v46  ;;  %v773_v49 = vmax.f32 %v765_v43, %v769_v47 }
 0x17d   : > { %776 = vst [vmem:[%s249_s22 + $0x10] sm:$0xff] %v772_v48 }
 0x17e   : > { %777 = vst [vmem:[%s249_s22 + $0x18] sm:$0xff] %v773_v49 }
 0x17f   : > { %1225 = shalt.err (!%p1222_p5)
}
 0x180   : > { %s1226_s23 = scalar_lea.hbm %s1521_s6, 512  ;;  %s1230_s14 = scalar_lea.hbm %s1574_s4, 1024 }
 0x181   : > { %p1227_p9 = scmp.ne.s32.totalorder %s1521_s6, %s1226_s23  ;;  %p1231_p3 = scmp.lt.u32.totalorder %s1521_s6, %s1574_s4 }
 0x182   : > { %p1232_p7 = scmp.lt.u32.totalorder %s1230_s14, %s1226_s23  ;;  %p1234_p4 = scmp.lt.u32.totalorder %s1226_s23, %s1521_s6 }
 0x183   : > { %p1228_p1 = pnand %p1227_p9, %p1430_p10 }
 0x184   : > { %p1233_p13 = por %p1232_p7, %p1231_p3 }
 0x185   : > { %p1229_p2 = pneg %p1228_p1 }
 0x186   : > { %p1235_p6 = por %p1234_p4, %p1233_p13 }
 0x188   : > { %p1236_p8 = pnand %p1235_p6, %p1229_p2 }
 0x18a   : > { %1239 = shalt.err (!%p1236_p8)
}
 0x18b   : > { %s1307_s13 = smov 256   ;;  %s1308_s24 = smov 16  }
 0x18c   : > { %985 = dma.vmem_to_hbm [thread:$0]  (%p1430_p10), %s1516_s28, 512, %s1521_s6, %s779_s18, %s1307_s13, %s1307_s13, %s1308_s24  }
 0x18d PF: > { %s810_s30 = sand.u32 1, %s1278_s15   ;;  %p1592_p12 = scmp.ne.s32.totalorder %s1582_s26, 0 }
 0x18e   : > { %p1593_p11 = scmp.ge.s32.totalorder %s1298_s20, 2  ;;  %s811_s9 = scalar_lea.sflag [#allocation4], %s810_s30 }
 0x190   : > { %p996_p0 = pnand %p1593_p11, %p1592_p12 }
 0x192   : > { %1273 = dma.done.wait (!%p996_p0), %s811_s9, 512  }
 0x193   : > { %1275 = vsyncadd (!%p996_p0), %s811_s9, 4294966784  ;;  %s21_s20 = sadd.s32 1, %s1298_s20   ;;  %s1594_s15 = smov %s1282_s16 }
 0x194   : > { %p18_p5 = scmp.ge.s32.totalorder %s21_s20, 4   ;;  %s1595_s16 = smov %s1286_s17 }
 0x195   : > { %s1596_s17 = smov %s1439_s10  ;;  %s1597_s18 = smov %s1294_s19 }
 0x196   : > { %s1598_s19 = smov %s1600_s5  ;;  %20 = sbr.rel (!%p18_p5) target bundleno = 7 (0x7), region = 85 }
 0x19d   :  { %816 = vsyncpa [#allocation3], 1 }
 0x19e   :  { %818 = vsyncpa [#allocation3 + $0x1], 1 }
 0x19f   :  { %819 = vsyncpa [#allocation6], 1 }
 0x1a0   :  { %820 = vsyncpa [#allocation4], 1 }
 0x1a1   :  { %822 = vsyncpa [#allocation4 + $0x1], 1 }

</bundles_post_ra>
